<compile_context>
chip_gen: v5e
topology: v5e:2x2
jax: 0.10.0
libtpu: 0.0.40
codegen_flags: <defaults>
</compile_context>

<pallas_src>
import functools
import math

import jax
import jax.numpy as jnp
from jax.experimental import pallas as pl
from jax.experimental.pallas import tpu as pltpu


def _pe_add_kernel(x_ref, pe_ref, o_ref, *, batch):
    # x_ref / o_ref: (tile_s, batch * d_model)   pe_ref: (tile_s, d_model)
    pe = pe_ref[...]
    if batch > 1:
        # Lane-replicate pe across batch: result[:, b*D + d] == pe[:, d].
        pe = jnp.tile(pe, (1, batch))
    o_ref[...] = x_ref[...] + pe       # one dense load / add / dense store


def make_positional_encoding(d_model, max_len=1000, dtype=jnp.float32):
    """Deterministically build pe, matching the PyTorch __init__ (even d_model)."""
    position = jnp.arange(max_len, dtype=jnp.float32)[:, None]              # (max_len, 1)
    div_term = jnp.exp(
        jnp.arange(0, d_model, 2, dtype=jnp.float32)
        * (-math.log(10000.0) / d_model)
    )                                                                        # (ceil(D/2),)
    angles = position * div_term                                             # (max_len, ceil(D/2))
    pe = jnp.zeros((max_len, 1, d_model), dtype=jnp.float32)
    pe = pe.at[:, 0, 0::2].set(jnp.sin(angles))
    pe = pe.at[:, 0, 1::2].set(jnp.cos(angles)[:, : d_model // 2])          # odd-D safe
    return pe.astype(dtype)


def _sublane_align(itemsize):
    # f32 -> 8 sublanes, bf16 -> 16, int8/fp8 -> 32 (packed dtypes pack along sublanes)
    return {4: 8, 2: 16, 1: 32}.get(itemsize, 8)


def _choose_tile_s(S, row_bytes, itemsize, *,
                   target_block_bytes=4 << 20,   # roofline plateau (>=85% at 1-4 MiB)
                   max_block_bytes=8 << 20,      # v7x: 2x in + 2x out buffers < ~32 MiB
                   min_steps=4):                 # enough for pipelining / v7x 2-TC split
    """Sublane-aligned tile; block size (not step count) drives the choice."""
    align = _sublane_align(itemsize)
    if S <= align:
        return S
    tile = int(min(target_block_bytes, max_block_bytes) // max(row_bytes, 1))
    if S // min_steps >= align:                  # keep a few steps only if S allows
        tile = min(tile, S // min_steps)
    tile = max(align, (tile // align) * align)   # sublane-align
    return S if tile >= S else tile


def positional_encoding_forward(x, pe, *, tile_s=None, donate_x=False):
    """x: (S, B, D); pe: (max_len, 1, D). Returns x + pe[:S] via a Pallas kernel."""
    S, B, D = x.shape
    max_len = pe.shape[0]
    assert S <= max_len, "sequence length exceeds positional-encoding max_len"
    itemsize = jnp.dtype(x.dtype).itemsize

    # Free layout plumbing: collapse contiguous trailing dims / drop singleton dim.
    x2 = x.reshape(S, B * D)
    pe2 = pe.reshape(max_len, D)
    if pe2.dtype != x.dtype:
        # One-off cast in the wrapper (max_len x D is tiny) -> fewer in-kernel ops
        # and fewer pe DMA bytes per step.  Note: this computes the add at x.dtype.
        pe2 = pe2.astype(x.dtype)

    if tile_s is None:
        tile_s = _choose_tile_s(S, B * D * itemsize, itemsize)

    align = _sublane_align(itemsize)
    if tile_s % align != 0:
        # tile_s == S but S is not sublane-aligned: make pe's leading dim equal the
        # block's so the BlockSpec full-dim escape applies (tiny one-off copy).
        pe2 = pe2[:S]

    grid = (pl.cdiv(S, tile_s),)                 # ragged last tile allowed
    kernel = functools.partial(_pe_add_kernel, batch=B)

    out2 = pl.pallas_call(
        kernel,
        out_shape=jax.ShapeDtypeStruct((S, B * D), x.dtype),
        grid=grid,
        in_specs=[
            pl.BlockSpec((tile_s, B * D), lambda i: (i, 0)),   # x tile (lane-dense)
            pl.BlockSpec((tile_s, D), lambda i: (i, 0)),       # pe tile, indexed in place
        ],
        out_specs=pl.BlockSpec((tile_s, B * D), lambda i: (i, 0)),
        compiler_params=pltpu.CompilerParams(
            dimension_semantics=("parallel",),     # shard grid across v7x's 2 TCs
            vmem_limit_bytes=48 << 20,             # 4 MiB blocks x (2 in + 2 out) + pe
        ),
        cost_estimate=pl.CostEstimate(
            flops=S * B * D,
            bytes_accessed=(2 * S * B * D + S * D) * itemsize,
            transcendentals=0,
        ),
        input_output_aliases=({0: 0} if donate_x else {}),
    )(x2, pe2)

    return out2.reshape(S, B, D)


if __name__ == "__main__":
    key = jax.random.PRNGKey(0)

    # Small shapes consistent with the module: seq=8, batch=2, d_model=32.
    S, B, D = 8, 2, 32
    x = jax.random.normal(key, (S, B, D), dtype=jnp.float32)
    pe = make_positional_encoding(d_model=D, max_len=1000)

    out = jax.block_until_ready(positional_encoding_forward(x, pe))
    ref = x + pe[:S]
    assert out.shape == (S, B, D)
    assert jnp.allclose(out, ref, atol=1e-6, rtol=1e-6)

    # Exercise the multi-step grid + ragged last tile path (lane-aligned D).
    S2, B2, D2 = 200, 2, 128
    x2 = jax.random.normal(jax.random.PRNGKey(1), (S2, B2, D2), dtype=jnp.float32)
    pe2 = make_positional_encoding(d_model=D2, max_len=1000)
    out2 = jax.block_until_ready(positional_encoding_forward(x2, pe2))
    ref2 = x2 + pe2[:S2]
    assert jnp.allclose(out2, ref2, atol=1e-6, rtol=1e-6)

    print("KERNEL_OK")
</pallas_src>

<mosaic_0001>
module attributes {stable_mosaic.version = 11 : i64} {
  func.func @_pe_add_kernel(%arg0: i32, %arg1: memref<8x64xf32, #tpu.memory_space<vmem>>, %arg2: memref<8x32xf32, #tpu.memory_space<vmem>>, %arg3: memref<8x64xf32, #tpu.memory_space<vmem>>) attributes {dimension_semantics = [#tpu.dimension_semantics<parallel>], iteration_bounds = array<i64: 1>, scalar_prefetch = 0 : i64, scratch_operands = 0 : i64, tpu.core_type = #tpu.core_type<tc>, window_params = [{transform_indices = @transform_0, window_bounds = array<i64: 8, 64>}, {transform_indices = @transform_1, window_bounds = array<i64: 8, 32>}, {transform_indices = @transform_2, window_bounds = array<i64: 8, 64>}]} {
    %c0 = arith.constant 0 : index
    %c0_0 = arith.constant 0 : index
    %0 = vector.load %arg2[%c0, %c0_0] : memref<8x32xf32, #tpu.memory_space<vmem>>, vector<8x32xf32>
    %1 = tpu.concatenate %0, %0 in 1 : vector<8x32xf32>, vector<8x32xf32> -> vector<8x64xf32>
    %c0_1 = arith.constant 0 : index
    %c0_2 = arith.constant 0 : index
    %2 = vector.load %arg1[%c0_1, %c0_2] : memref<8x64xf32, #tpu.memory_space<vmem>>, vector<8x64xf32>
    %3 = arith.addf %2, %1 : vector<8x64xf32>
    %c0_3 = arith.constant 0 : index
    %c0_4 = arith.constant 0 : index
    %4 = vector.load %arg3[%c0_3, %c0_4] : memref<8x64xf32, #tpu.memory_space<vmem>>, vector<8x64xf32>
    tpu.vector_store %arg3[%c0_3, %c0_4], %3 {strides = array<i32>} : memref<8x64xf32, #tpu.memory_space<vmem>>, vector<8x64xf32>,
    return
  }
  func.func @transform_0(%arg0: i32) -> (i32, i32) {
    %c0_i32 = arith.constant 0 : i32
    %c0_i32_0 = arith.constant 0 : i32
    return %arg0, %c0_i32 : i32, i32
  }
  func.func @transform_1(%arg0: i32) -> (i32, i32) {
    %c0_i32 = arith.constant 0 : i32
    %c0_i32_0 = arith.constant 0 : i32
    return %arg0, %c0_i32 : i32, i32
  }
  func.func @transform_2(%arg0: i32) -> (i32, i32) {
    %c0_i32 = arith.constant 0 : i32
    %c0_i32_0 = arith.constant 0 : i32
    return %arg0, %c0_i32 : i32, i32
  }
}

</mosaic_0001>

<bundles_post_ra>
// kernel: tpu_custom_call.1
= control target key start
LH: loop header
LB: loop body
LE: loop exit
PB: predicated region body
PF: predicated region fallthrough
CT: control target
= control target key end

     0   :  { %s93_s0 = inlined_call_operand.vmem [shape: f32[8,64], index: 0, kind: input, shape index: {}]   ;;  %s94_s1 = inlined_call_operand.vmem [shape: f32[1000,32], index: 1, kind: input, shape index: {}]   ;;  %s95_s2 = inlined_call_operand.hbm [shape: f32[8,64], index: 2, kind: output, shape index: {}]  }
   0x1   :  { %v12_v0 = vld [vmem:[%s94_s1] sm:$0xff] }
   0x2   :  { %7 = vsyncpa [#allocation3], 0  ;;  %s67_s11 = smov 32   ;;  %vm17_vm0 = vcmask 261120   ;;  %v19_v1 = vld [vmem:[%s93_s0] sm:$0xff]  ;;  %s68_s14 = smov [#allocation2]  }
   0x3   :  { %14 = vrot.lane.b32.xlu0 %v12_v0, %s67_s11  ;;  %s28_s15 = sshll.u32 %s68_s14, 4  ;;  %s30_s18 = sshll.u32 %s95_s2, 4  ;;  %vm21_vm1 = vcmask 523264   ;;  %s29_s15 = int_to_ptr.vmem [resolvable:$true] %s28_s15  ;;  %s31_s18 = int_to_ptr.hbm [resolvable:$true] %s30_s18 }
  0x75   :  { %v15_v2 = vpop.permute.xlu0 %14 }
  0x76   :  { %v18_v3 = vsel %vm17_vm0, %v12_v0, %v15_v2 }
  0x77   :  { %v20_v4 = vadd.f32 %v19_v1, %v18_v3 }
  0x79   :  { %22 = vst.msk [vmem:[#allocation2] sm:$0xff] %vm21_vm1, %v20_v4 }
  0x7a   :  { %33 = dma.vmem_to_hbm [thread:$0]  %s29_s15, 128, %s31_s18, [#allocation3]  }
  0x7b   :  { %65 = dma.done.wait [#allocation3], 128  }
  0x7c   :  { %66 = vsyncadd [#allocation3], 4294967168 }
  0x7d   :  { %38 = vsyncpa [#allocation3], 1 }

</bundles_post_ra>
